<compile_context>
chip_gen: v6e
topology: v6e:2x2x1
jax: 0.10.0
libtpu: 0.0.40
codegen_flags: <defaults>
</compile_context>

<pallas_src>
import jax
import jax.numpy as jnp
from jax.experimental import pallas as pl
from jax.experimental.pallas import tpu as pltpu


# -----------------------------------------------------------------------------
# Kernel bodies:  (TB, C, V) x (TB, V, W) -> (TB, C, W)
# -----------------------------------------------------------------------------

def _dy_nconv_kernel_mxu(x_ref, a_ref, o_ref):
    """Batched MXU matmul over the TB batch dim; f32 accumulation."""
    o_ref[...] = jnp.einsum(
        "bcv,bvw->bcw", x_ref[...], a_ref[...],
        preferred_element_type=jnp.float32,
    ).astype(o_ref.dtype)


def _dy_nconv_kernel_vpu(x_ref, a_ref, o_ref):
    """VPU multiply-accumulate for tiny C/V/W where MXU is mostly padding."""
    x = x_ref[...].astype(jnp.float32)            # (TB, C, V)  — tiny block
    a = a_ref[...].astype(jnp.float32)            # (TB, V, W)
    prod = x[:, :, :, None] * a[:, None, :, :]    # (TB, C, V, W)
    o_ref[...] = jnp.sum(prod, axis=2).astype(o_ref.dtype)


# -----------------------------------------------------------------------------
# Tiling / VMEM sizing
# -----------------------------------------------------------------------------

_MXU_MIN_VW = 64 * 64      # switch to the MXU path once V*W is at least this
_MIN_GRID_STEPS = 8        # keep both v7x TCs fed and the pipeline overlapped


def _largest_divisor_leq(n, cap):
    cap = max(1, min(n, int(cap)))
    for d in range(cap, 0, -1):
        if n % d == 0:
            return d
    return 1


def _vmem_capacity_bytes():
    try:
        cap = int(pltpu.get_tpu_info().vmem_capacity_bytes)
        if cap > 0:
            return cap
    except Exception:
        pass
    return 64 * 1024 * 1024   # conservative fallback (v7x per-TC VMEM)


def _pick_batch_tile(B, C, V, W, x_item, a_item, o_item, use_mxu, vmem_cap):
    """Pick TB (a divisor of B) so blocks + temporaries fit ~30% of VMEM."""
    # Double-buffered HBM<->VMEM blocks, per batch element.
    per_b = 2 * (C * V * x_item + V * W * a_item + C * W * o_item)
    # In-kernel f32 temporaries, per batch element (honest accounting).
    if use_mxu:
        per_b += C * W * 4                                   # f32 result
    else:
        per_b += (C * V + V * W + C * V * W + C * W) * 4     # casts + prod + acc
    budget = int(vmem_cap * 0.30)
    cap = max(1, budget // max(per_b, 1))
    # Keep >= _MIN_GRID_STEPS grid steps whenever B allows it.
    cap = min(cap, max(1, B // _MIN_GRID_STEPS))
    TB = _largest_divisor_leq(B, cap)
    return TB, TB * per_b


# -----------------------------------------------------------------------------
# Public wrapper
# -----------------------------------------------------------------------------

def dy_nconv(x, A):
    """x: (N, C, V, L), A: (N, V, W, L) -> (N, C, W, L).

    Matches torch.einsum('ncvl,nvwl->ncwl', (x, A)).contiguous().
    """
    N, C, V, L = x.shape
    Na, Va, W, La = A.shape
    assert N == Na and V == Va and L == La

    out_dtype = jnp.result_type(x.dtype, A.dtype)

    # Relayout so each (n, l) pair is one (C,V)@(V,W) matmul with W on lanes.
    B = N * L
    xb = jnp.transpose(x, (0, 3, 1, 2)).reshape(B, C, V)   # (B, C, V)
    ab = jnp.transpose(A, (0, 3, 1, 2)).reshape(B, V, W)   # (B, V, W)

    use_mxu = (V * W) >= _MXU_MIN_VW
    kernel = _dy_nconv_kernel_mxu if use_mxu else _dy_nconv_kernel_vpu

    vmem_cap = _vmem_capacity_bytes()
    TB, vmem_needed = _pick_batch_tile(
        B, C, V, W,
        jnp.dtype(x.dtype).itemsize, jnp.dtype(A.dtype).itemsize,
        jnp.dtype(out_dtype).itemsize, use_mxu, vmem_cap)

    # Scoped-VMEM limit: blocks + 2x headroom, capped at 70% of this
    # generation's physical VMEM (64 MiB v7x, 128 MiB v5e/v6e).
    vmem_limit = int(min(vmem_cap * 0.70,
                         max(vmem_needed * 2, 32 * 1024 * 1024)))

    grid = (B // TB,)

    out = pl.pallas_call(
        kernel,
        out_shape=jax.ShapeDtypeStruct((B, C, W), out_dtype),
        grid_spec=pltpu.PrefetchScalarGridSpec(
            num_scalar_prefetch=0,
            grid=grid,
            in_specs=[
                pl.BlockSpec((TB, C, V), lambda b: (b, 0, 0)),
                pl.BlockSpec((TB, V, W), lambda b: (b, 0, 0)),
            ],
            out_specs=pl.BlockSpec((TB, C, W), lambda b: (b, 0, 0)),
        ),
        compiler_params=pltpu.CompilerParams(
            dimension_semantics=("parallel",),
            vmem_limit_bytes=vmem_limit,
        ),
    )(xb, ab)

    # (N*L, C, W) -> (N, L, C, W) -> (N, C, W, L)
    return jnp.transpose(out.reshape(N, L, C, W), (0, 2, 3, 1))


if __name__ == "__main__":
    # Small shapes consistent with the einsum: N=2, C=4, V=16, W=16, L=8
    key = jax.random.PRNGKey(0)
    kx, ka = jax.random.split(key)
    N, C, V, W, L = 2, 4, 16, 16, 8
    x = jax.random.normal(kx, (N, C, V, L), dtype=jnp.float32)
    A = jax.random.normal(ka, (N, V, W, L), dtype=jnp.float32)

    out = dy_nconv(x, A)
    jax.block_until_ready(out)

    # Reference check against plain-JAX einsum (same semantics as torch.einsum)
    ref = jnp.einsum("ncvl,nvwl->ncwl", x, A)
    assert out.shape == ref.shape == (N, C, W, L)
    assert jnp.allclose(out, ref, atol=1e-4, rtol=1e-4)

    print("KERNEL_OK")
</pallas_src>

<mosaic_0001>
module attributes {stable_mosaic.version = 11 : i64} {
  func.func @_dy_nconv_kernel_vpu(%arg0: i32, %arg1: memref<2x4x16xf32, #tpu.memory_space<vmem>>, %arg2: memref<2x16x16xf32, #tpu.memory_space<vmem>>, %arg3: memref<2x4x16xf32, #tpu.memory_space<vmem>>) attributes {dimension_semantics = [#tpu.dimension_semantics<parallel>], iteration_bounds = array<i64: 8>, scalar_prefetch = 0 : i64, scratch_operands = 0 : i64, tpu.core_type = #tpu.core_type<tc>, window_params = [{transform_indices = @transform_0, window_bounds = array<i64: 2, 4, 16>}, {transform_indices = @transform_1, window_bounds = array<i64: 2, 16, 16>}, {transform_indices = @transform_2, window_bounds = array<i64: 2, 4, 16>}]} {
    %c0 = arith.constant 0 : index
    %c0_0 = arith.constant 0 : index
    %c0_1 = arith.constant 0 : index
    %0 = vector.load %arg1[%c0, %c0_0, %c0_1] : memref<2x4x16xf32, #tpu.memory_space<vmem>>, vector<2x4x16xf32>
    %c0_2 = arith.constant 0 : index
    %c0_3 = arith.constant 0 : index
    %c0_4 = arith.constant 0 : index
    %1 = vector.load %arg2[%c0_2, %c0_3, %c0_4] : memref<2x16x16xf32, #tpu.memory_space<vmem>>, vector<2x16x16xf32>
    %2 = vector.shape_cast %0 : vector<2x4x16xf32> to vector<2x4x16x1xf32>
    %3 = vector.shape_cast %1 : vector<2x16x16xf32> to vector<2x1x16x16xf32>
    %4 = vector.broadcast %2 : vector<2x4x16x1xf32> to vector<2x4x16x16xf32>
    %5 = vector.broadcast %3 : vector<2x1x16x16xf32> to vector<2x4x16x16xf32>
    %6 = arith.mulf %4, %5 : vector<2x4x16x16xf32>
    %cst = arith.constant dense<0.000000e+00> : vector<2x4x16xf32>
    %7 = vector.multi_reduction <add>, %6, %cst [2] : vector<2x4x16x16xf32> to vector<2x4x16xf32>
    %c0_5 = arith.constant 0 : index
    %c0_6 = arith.constant 0 : index
    %c0_7 = arith.constant 0 : index
    %8 = vector.load %arg3[%c0_5, %c0_6, %c0_7] : memref<2x4x16xf32, #tpu.memory_space<vmem>>, vector<2x4x16xf32>
    tpu.vector_store %arg3[%c0_5, %c0_6, %c0_7], %7 {strides = array<i32>} : memref<2x4x16xf32, #tpu.memory_space<vmem>>, vector<2x4x16xf32>,
    return
  }
  func.func @transform_0(%arg0: i32) -> (i32, i32, i32) {
    %c0_i32 = arith.constant 0 : i32
    %c0_i32_0 = arith.constant 0 : i32
    %c0_i32_1 = arith.constant 0 : i32
    return %arg0, %c0_i32, %c0_i32_0 : i32, i32, i32
  }
  func.func @transform_1(%arg0: i32) -> (i32, i32, i32) {
    %c0_i32 = arith.constant 0 : i32
    %c0_i32_0 = arith.constant 0 : i32
    %c0_i32_1 = arith.constant 0 : i32
    return %arg0, %c0_i32, %c0_i32_0 : i32, i32, i32
  }
  func.func @transform_2(%arg0: i32) -> (i32, i32, i32) {
    %c0_i32 = arith.constant 0 : i32
    %c0_i32_0 = arith.constant 0 : i32
    %c0_i32_1 = arith.constant 0 : i32
    return %arg0, %c0_i32, %c0_i32_0 : i32, i32, i32
  }
}

</mosaic_0001>

<bundles_post_ra>
// kernel: tpu_custom_call.1
= control target key start
LH: loop header
LB: loop body
LE: loop exit
PB: predicated region body
PF: predicated region fallthrough
CT: control target
= control target key end

     0   :  { %7 = vsyncpa [#allocation3], 0  ;;  %s998_s0 = inlined_call_operand.hbm [shape: f32[16,4,16], index: 0, kind: input, shape index: {}]   ;;  %s999_s1 = inlined_call_operand.hbm [shape: f32[16,16,16], index: 1, kind: input, shape index: {}]   ;;  %s1000_s2 = inlined_call_operand.hbm [shape: f32[16,4,16], index: 2, kind: output, shape index: {}]  }
   0x1   :  { %9 = vsyncpa [#allocation3 + $0x1], 0 }
   0x2   :  { %10 = vsyncpa [#allocation6], 0 }
   0x3   :  { %12 = vsyncpa [#allocation6 + $0x1], 0 }
   0x4   :  { %13 = vsyncpa [#allocation4], 0 }
   0x5   :  { %15 = vsyncpa [#allocation4 + $0x1], 0  ;;  %s751_s9 = smov 0   ;;  %s753_s10 = smov 0  }
   0x6   :  { %s755_s11 = smov 0   ;;  %s757_s12 = smov 0  }
   0x7 LB: > { %s772_s13 = sadd.s32 4294967295, %s725_s12   ;;  %s521_s14 = sadd.s32 4294967294, %s725_s12   ;;  %s725_s12 = sphi %s757_s12, %s1015_s12   ;;  %s721_s11 = sphi %s755_s11, %s1014_s11   ;;  %s717_s10 = sphi %s753_s10, %s1013_s10   ;;  %s713_s9 = sphi %s751_s9, %s1012_s9  }
   0x8   : > { %s776_s15 = sadd.s32 1, %s725_s12   ;;  %s28_s16 = sadd.s32 1, %s721_s11 }
   0x9   : > { %s25_s17 = ssub.s32 %s725_s12, %s776_s15  ;;  %p35_p0 = scmp.ne.s32.totalorder %s721_s11, %s717_s10 }
   0xa   : > { %p26_p1 = scmp.eq.s32.totalorder %s25_s17, 0  ;;  %p36_p2 = scmp.eq.s32.totalorder %s725_s12, 0 }
   0xb   : > { %p41_p3 = scmp.ne.s32.totalorder %s717_s10, %s713_s9  ;;  %p42_p4 = scmp.eq.s32.totalorder %s772_s13, 0 }
   0xc   : > { %s788_s18 = scalar_select %p26_p1, %s721_s11, %s28_s16  }
   0xd   : > { %p790_p5 = por %p36_p2, %p35_p0  ;;  %p794_p6 = por %p42_p4, %p41_p3 }
   0xe   : > { %p91_p7 = scmp.eq.s32.totalorder %s772_s13, 7  ;;  %p97_p8 = scmp.eq.s32.totalorder %s521_s14, 7 }
   0xf   : > { %s1004_s20 = scalar_select %p794_p6, 1, 0 }
  0x10   : > { %p561_p9 = scmp.lt.s32.totalorder %s725_s12, 8  ;;  %p800_p10 = por %p91_p7, %p35_p0 }
  0x11   : > { %p804_p11 = por %p97_p8, %p41_p3  ;;  %s809_s23 = sand.u32 1, %s721_s11  }
  0x12   : > { %s1005_s21 = scalar_select %p800_p10, 1, 0 }
  0x13   : > { %s1006_s22 = scalar_select %p804_p11, 1, 0 }
  0x14   : > { %s540_s24 = sshll.u32 %s725_s12, 7  ;;  %s524_s25 = sshll.u32 %s809_s23, 3 }
  0x15   : > { %s816_s28 = scalar_lea.hbm %s998_s0, %s540_s24  ;;  %s121_s29 = scalar_lea.vmem [#allocation2], %s524_s25 }
  0x16   : > { %s128_s30 = sshll.u32 %s121_s29, 4  ;;  %p820_p12 = pnand %p561_p9, %p790_p5  ;;  %s824_s30 = int_to_ptr.vmem [resolvable:$true] %s128_s30 }
  0x17   : > { %s118_s4 = scalar_lea.sflag [#allocation3], %s809_s23  ;;  %s601_s5 = scalar_lea.hbm %s816_s28, 128 }
  0x18   : > { %p602_p13 = scmp.ne.s32.totalorder %s816_s28, %s601_s5  ;;  %p603_p0 = pneg %p820_p12 }
  0x19   : > { %s606_s8 = scalar_lea.hbm %s998_s0, 1024  ;;  %p607_p3 = scmp.lt.s32.totalorder %s816_s28, %s998_s0 }
  0x1a   : > { %p604_p1 = pnand %p603_p0, %p602_p13  ;;  %p608_p4 = scmp.lt.s32.totalorder %s606_s8, %s601_s5 }
  0x1c   : > { %p605_p2 = pneg %p604_p1  ;;  %p609_p5 = por %p608_p4, %p607_p3 }
  0x1e   : > { %p610_p7 = pnand %p609_p5, %p605_p2 }
  0x20   : > { %613 = shalt.err (!%p610_p7)
}
  0x21   : > { %s614_s17 = scalar_lea.vmem %s824_s30, 128  ;;  %s727_s19 = smov [#allocation2]  }
  0x22   : > { %p615_p8 = scmp.ne.s32.totalorder %s824_s30, %s614_s17  ;;  %s619_s24 = sshll.u32 %s727_s19, 4  ;;  %s620_s24 = int_to_ptr.vmem [resolvable:$false] %s619_s24 }
  0x23   : > { %s621_s25 = scalar_lea.vmem %s620_s24, 256  ;;  %p622_p1 = scmp.lt.s32.totalorder %s824_s30, %s620_s24 }
  0x24   : > { %p617_p9 = pnand %p615_p8, %p603_p0  ;;  %p623_p11 = scmp.lt.s32.totalorder %s621_s25, %s614_s17 }
  0x26   : > { %p618_p13 = pneg %p617_p9  ;;  %p624_p10 = por %p623_p11, %p622_p1 }
  0x28   : > { %p625_p3 = pnand %p624_p10, %p618_p13 }
  0x2a   : > { %628 = shalt.err (!%p625_p3)
}
  0x2b   : > { %s728_s26 = smov 64   ;;  %s729_s27 = smov 4  }
  0x2c   : > { %553 = dma.hbm_to_vmem [thread:$0]  (!%p820_p12), %s816_s28, 128, %s824_s30, %s118_s4, %s728_s26, %s728_s26, %s729_s27  }
  0x2d   : > { %p531_p2 = scmp.ge.s32.totalorder %s725_s12, 1  ;;  %p158_p4 = scmp.lt.s32.totalorder %s725_s12, 9 }
  0x2e   : > { %s527_s29 = sshll.u32 %s809_s23, 5  ;;  %s542_s6 = sshll.u32 %s725_s12, 9 }
  0x2f   : > { %p856_p10 = pnand %p531_p2, %p158_p4  ;;  %s142_s7 = scalar_lea.vmem [#allocation5], %s527_s29 }
  0x30   : > { %s150_s8 = sshll.u32 %s142_s7, 4  ;;  %s864_s17 = scalar_lea.hbm %s999_s1, %s542_s6  ;;  %s866_s8 = int_to_ptr.vmem [resolvable:$true] %s150_s8 }
  0x31   : > { %s139_s28 = scalar_lea.sflag [#allocation6], %s809_s23  ;;  %s629_s30 = scalar_lea.hbm %s864_s17, 512 }
  0x32   : > { %p630_p11 = scmp.ne.s32.totalorder %s864_s17, %s629_s30  ;;  %s634_s24 = scalar_lea.hbm %s999_s1, 4096 }
  0x33   : > { %p635_p8 = scmp.lt.s32.totalorder %s864_s17, %s999_s1  ;;  %p636_p9 = scmp.lt.s32.totalorder %s634_s24, %s629_s30 }
  0x34   : > { %p632_p5 = pnand %p630_p11, %p603_p0 }
  0x35   : > { %p637_p13 = por %p636_p9, %p635_p8 }
  0x36   : > { %p633_p7 = pneg %p632_p5 }
  0x38   : > { %p638_p1 = pnand %p637_p13, %p633_p7 }
  0x3a   : > { %641 = shalt.err (!%p638_p1)
}
  0x3b   : > { %s642_s27 = scalar_lea.vmem %s866_s8, 512  ;;  %s730_s29 = smov [#allocation5]  }
  0x3c   : > { %p643_p3 = scmp.ne.s32.totalorder %s866_s8, %s642_s27  ;;  %s647_s6 = sshll.u32 %s730_s29, 4  ;;  %s648_s6 = int_to_ptr.vmem [resolvable:$false] %s647_s6 }
  0x3d   : > { %s649_s7 = scalar_lea.vmem %s648_s6, 1024  ;;  %p650_p11 = scmp.lt.s32.totalorder %s866_s8, %s648_s6 }
  0x3e   : > { %p645_p2 = pnand %p643_p3, %p603_p0  ;;  %p651_p5 = scmp.lt.s32.totalorder %s649_s7, %s642_s27 }
  0x40   : > { %p646_p4 = pneg %p645_p2  ;;  %p652_p6 = por %p651_p5, %p650_p11 }
  0x42   : > { %p653_p8 = pnand %p652_p6, %p646_p4 }
  0x44   : > { %656 = shalt.err (!%p653_p8)
}
  0x45   : > { %s731_s14 = smov 128   ;;  %s732_s16 = smov 8  }
  0x46   : > { %556 = dma.hbm_to_vmem [thread:$0]  (!%p820_p12), %s864_s17, 512, %s866_s8, %s139_s28, %s731_s14, %s731_s14, %s732_s16  }
  0x47   : > { %162 = sbr.rel (%p856_p10) target bundleno = 263 (0x107), region = 28  ;;  %s896_s30 = sand.u32 (!%p856_p10), 1, %s717_s10  }
  0x48   : > { %s532_s4 = sshll.u32 (!%p856_p10), %s896_s30, 3  ;;  %s165_s19 = scalar_lea.sflag (!%p856_p10), [#allocation3], %s896_s30 }
  0x49   : > { %s168_s24 = scalar_lea.vmem (!%p856_p10), [#allocation2], %s532_s4  ;;  %p1009_p6 = scmp.ne.s32.totalorder (!%p856_p10), %s1004_s20, 0 }
  0x4c   : > { %700 = dma.done.wait (%p1009_p6), %s165_s19, 128  }
  0x4d   : > { %702 = vsyncadd (%p1009_p6), %s165_s19, 4294967168  ;;  %s533_s23 = sshll.u32 %s896_s30, 5  ;;  %s174_s3 = scalar_lea.sflag [#allocation6], %s896_s30 }
  0x4e   : > { %s908_s5 = scalar_lea.vmem [#allocation5], %s533_s23 }
  0x4f   : > { %704 = dma.done.wait (%p1009_p6), %s174_s3, 512  }
  0x50   : > { %706 = vsyncadd (%p1009_p6), %s174_s3, 4294966784  ;;  %v212_v0 = vlaneseq  ;;  %v206_v4 = vld [vmem:[%s168_s24] sm:$0xf]  ;;  %v207_v7 = vld [vmem:[%s168_s24 + $0x4] sm:$0xf]  ;;  %vm316_vm0 = vcmask 130048  }
  0x51   : > { %v208_v18 = vld [vmem:[%s908_s5] sm:$0xff]  ;;  %v209_v19 = vld [vmem:[%s908_s5 + $0x8] sm:$0xff]  ;;  %v918_v27 = vld [vmem:[%s908_s5 + $0x18] sm:$0xff]  ;;  %vm397_vm1 = vcmask 1041409   ;;  %vm399_vm2 = vcmask 1042434   ;;  %vm401_vm3 = vcmask 1043459  }
  0x52   : > { %v213_v1 = vshrl.u32 %v212_v0, 7  ;;  %v210_v29 = vld [vmem:[%s908_s5 + $0x10] sm:$0xff]  ;;  %vm408_vm4 = vcmask 125952   ;;  %s543_s20 = sshll.u32 %s772_s13, 7  ;;  %s202_s8 = scalar_lea.vmem [#allocation7], %s532_s4 }
  0x53   : > { %s425_s17 = sshll.u32 %s202_s8, 4  ;;  %s951_s26 = scalar_lea.hbm %s1000_s2, %s543_s20  ;;  %s953_s17 = int_to_ptr.vmem [resolvable:$true] %s425_s17 }
  0x54   : > { %v225_v2 = vsub.s32 1, %v213_v1  ;;  %v214_v3 = vsub.s32 0, %v213_v1  ;;  %v236_v10 = vsub.s32 2, %v213_v1  ;;  %v247_v13 = vsub.s32 3, %v213_v1  ;;  %s412_s13 = scalar_lea.sflag [#allocation4], %s896_s30  ;;  %s657_s27 = scalar_lea.vmem %s953_s17, 128 }
  0x55   : > { %p658_p12 = scmp.ne.s32.totalorder %s953_s17, %s657_s27  ;;  %p1010_p0 = scmp.ne.s32.totalorder %s1005_s21, 0 }
  0x56   : > { %v226_v5 = vrot.slane %v206_v4, %v225_v2  ;;  %v215_v6 = vrot.slane %v206_v4, %v214_v3  ;;  %v259_v8 = vrot.slane %v207_v7, %v214_v3  ;;  %v270_v9 = vrot.slane %v207_v7, %v225_v2  ;;  %s733_s29 = smov [#allocation7]  }
  0x57   : > { %v237_v11 = vrot.slane %v206_v4, %v236_v10  ;;  %v281_v12 = vrot.slane %v207_v7, %v236_v10  ;;  %v248_v14 = vrot.slane %v206_v4, %v247_v13  ;;  %v292_v15 = vrot.slane %v207_v7, %v247_v13  ;;  %p659_p10 = pnand %p658_p12, %p1010_p0  ;;  %s661_s6 = sshll.u32 %s733_s29, 4  ;;  %s662_s6 = int_to_ptr.vmem [resolvable:$false] %s661_s6 }
  0x58   : > { %228 = vbcast.lane.b32.xlu1 %v226_v5, 256  ;;  %217 = vbcast.lane.b32.xlu0 %v215_v6, 256  ;;  %s663_s7 = scalar_lea.vmem %s662_s6, 256  ;;  %p664_p9 = scmp.lt.s32.totalorder %s953_s17, %s662_s6 }
  0x59   : > { %p660_p7 = pneg %p659_p10  ;;  %p665_p13 = scmp.lt.s32.totalorder %s663_s7, %s657_s27 }
  0x5b   : > { %p666_p1 = por %p665_p13, %p664_p9 }
  0x5c   : > { %232 = vbcast.lane.b32.xlu1 %v226_v5, 264  ;;  %221 = vbcast.lane.b32.xlu0 %v215_v6, 264 }
  0x5d   : > { %p667_p3 = pnand %p666_p1, %p660_p7 }
  0x60   : > { %265 = vbcast.lane.b32.xlu1 %v259_v8, 264  ;;  %261 = vbcast.lane.b32.xlu0 %v259_v8, 256 }
  0x64   : > { %276 = vbcast.lane.b32.xlu1 %v270_v9, 264  ;;  %272 = vbcast.lane.b32.xlu0 %v270_v9, 256 }
  0x68   : > { %243 = vbcast.lane.b32.xlu1 %v237_v11, 264  ;;  %239 = vbcast.lane.b32.xlu0 %v237_v11, 256 }
  0x6c   : > { %287 = vbcast.lane.b32.xlu1 %v281_v12, 264  ;;  %283 = vbcast.lane.b32.xlu0 %v281_v12, 256 }
  0x70   : > { %254 = vbcast.lane.b32.xlu1 %v248_v14, 264  ;;  %250 = vbcast.lane.b32.xlu0 %v248_v14, 256 }
  0x74   : > { %298 = vbcast.lane.b32.xlu1 %v292_v15, 264  ;;  %294 = vbcast.lane.b32.xlu0 %v292_v15, 256 }
  0xca   : > { %v229_v16 = vpop.permute.xlu1 %228  ;;  %v218_v17 = vpop.permute.xlu0 %217 }
  0xcb   : > { %v302_v22 = vmul.f32 %v229_v16, %v208_v18  ;;  %v300_v25 = vmul.f32 %v218_v17, %v208_v18 }
  0xcd   : > { %v326_v31 = vsel %vm316_vm0, %v302_v22, 0.0  ;;  %v317_v34 = vsel %vm316_vm0, %v300_v25, 0.0 }
  0xce   : > { %v233_v20 = vpop.permute.xlu1 %232  ;;  %v222_v21 = vpop.permute.xlu0 %221 }
  0xcf   : > { %v303_v23 = vmul.f32 %v233_v20, %v209_v19  ;;  %v301_v24 = vmul.f32 %v222_v21, %v209_v19 }
  0xd1   : > { %v327_v26 = vsel %vm316_vm0, %v303_v23, 0.0  ;;  %v318_v32 = vsel %vm316_vm0, %v301_v24, 0.0 }
  0xd2   : > { %v266_v28 = vpop.permute.xlu1 %265  ;;  %v262_v30 = vpop.permute.xlu0 %261  ;;  %v328_v33 = vadd.f32 %v327_v26, %v326_v31  ;;  %v319_v37 = vadd.f32 %v318_v32, %v317_v34 }
  0xd3   : > { %v309_v35 = vmul.f32 %v266_v28, %v918_v27  ;;  %v308_v36 = vmul.f32 %v262_v30, %v210_v29 }
  0xd4   : > { %v329_v42 = vrot.slane %v328_v33, 4  ;;  %v320_v47 = vrot.slane %v319_v37, 4 }
  0xd5   : > { %v354_v43 = vsel %vm316_vm0, %v309_v35, 0.0  ;;  %v353_v44 = vsel %vm316_vm0, %v308_v36, 0.0 }
  0xd6   : > { %v277_v38 = vpop.permute.xlu1 %276  ;;  %v273_v39 = vpop.permute.xlu0 %272  ;;  %v355_v53 = vadd.f32 %v354_v43, %v353_v44  ;;  %v330_v54 = vadd.f32 %v329_v42, %v328_v33  ;;  %v321_v57 = vadd.f32 %v320_v47, %v319_v37 }
  0xd7   : > { %v311_v40 = vmul.f32 %v277_v38, %v918_v27  ;;  %v310_v41 = vmul.f32 %v273_v39, %v210_v29 }
  0xd8   : > { %v356_v0 = vrot.slane %v355_v53, 4  ;;  %v331_v1 = vrot.slane %v330_v54, 2  ;;  %v322_v5 = vrot.slane %v321_v57, 2 }
  0xd9   : > { %v363_v45 = vsel %vm316_vm0, %v311_v40, 0.0  ;;  %v362_v46 = vsel %vm316_vm0, %v310_v41, 0.0 }
  0xda   : > { %v364_v48 = vadd.f32 %v363_v45, %v362_v46  ;;  %v244_v49 = vpop.permute.xlu1 %243  ;;  %v240_v50 = vpop.permute.xlu0 %239  ;;  %v357_v13 = vadd.f32 %v356_v0, %v355_v53  ;;  %v332_v15 = vadd.f32 %v331_v1, %v330_v54  ;;  %v323_v21 = vadd.f32 %v322_v5, %v321_v57 }
  0xdb   : > { %v305_v51 = vmul.f32 %v244_v49, %v209_v19  ;;  %v304_v52 = vmul.f32 %v240_v50, %v208_v18 }
  0xdc   : > { %v365_v58 = vrot.slane %v364_v48, 4  ;;  %v333_v33 = vrot.slane %v332_v15, 1  ;;  %v324_v36 = vrot.slane %v323_v21, 1 }
  0xdd   : > { %v336_v55 = vsel %vm316_vm0, %v305_v51, 0.0  ;;  %v335_v56 = vsel %vm316_vm0, %v304_v52, 0.0 }
  0xde   : > { %v288_v59 = vpop.permute.xlu1 %287  ;;  %v284_v60 = vpop.permute.xlu0 %283  ;;  %v337_v61 = vadd.f32 %v336_v55, %v335_v56  ;;  %v366_v6 = vadd.f32 %v365_v58, %v364_v48  ;;  %v334_v45 = vadd.f32 %v333_v33, %v332_v15 }
  0xdf   : > { %v313_v62 = vmul.f32 %v288_v59, %v918_v27  ;;  %v312_v63 = vmul.f32 %v284_v60, %v210_v29 }
  0xe0   : > { %v338_v2 = vrot.slane %v337_v61, 4  ;;  %v367_v22 = vrot.slane %v366_v6, 2 }
  0xe1   : > { %v372_v3 = vsel %vm316_vm0, %v313_v62, 0.0  ;;  %v371_v4 = vsel %vm316_vm0, %v312_v63, 0.0 }
  0xe2   : > { %v373_v7 = vadd.f32 %v372_v3, %v371_v4  ;;  %v255_v8 = vpop.permute.xlu1 %254  ;;  %v251_v9 = vpop.permute.xlu0 %250  ;;  %v339_v10 = vadd.f32 %v338_v2, %v337_v61  ;;  %v368_v37 = vadd.f32 %v367_v22, %v366_v6 }
  0xe3   : > { %v307_v11 = vmul.f32 %v255_v8, %v209_v19  ;;  %v306_v12 = vmul.f32 %v251_v9, %v208_v18  ;;  %v358_v19 = vrot.slane %v357_v13, 2 }
  0xe4   : > { %v374_v14 = vrot.slane %v373_v7, 4  ;;  %v340_v16 = vrot.slane %v339_v10, 2 }
  0xe5   : > { %v345_v17 = vsel %vm316_vm0, %v307_v11, 0.0  ;;  %v344_v20 = vsel %vm316_vm0, %v306_v12, 0.0  ;;  %v359_v42 = vadd.f32 %v358_v19, %v357_v13 }
  0xe6   : > { %v375_v23 = vadd.f32 %v374_v14, %v373_v7  ;;  %v346_v24 = vadd.f32 %v345_v17, %v344_v20  ;;  %v299_v25 = vpop.permute.xlu1 %298  ;;  %v295_v26 = vpop.permute.xlu0 %294  ;;  %v341_v28 = vadd.f32 %v340_v16, %v339_v10 }
  0xe7   : > { %v315_v30 = vmul.f32 %v299_v25, %v918_v27  ;;  %v314_v31 = vmul.f32 %v295_v26, %v210_v29  ;;  %v325_v27 = vadd.f32 %v324_v36, %v323_v21  ;;  %v369_v29 = vrot.slane %v368_v37, 1 }
  0xe8   : > { %v376_v18 = vrot.slane %v375_v23, 2  ;;  %v347_v32 = vrot.slane %v346_v24, 4  ;;  %v342_v40 = vrot.slane %v341_v28, 1  ;;  %v360_v50 = vrot.slane %v359_v42, 1 }
  0xe9   : > { %v381_v34 = vsel %vm316_vm0, %v315_v30, 0.0  ;;  %v380_v35 = vsel %vm316_vm0, %v314_v31, 0.0  ;;  %v398_v53 = vsel %vm397_vm1, %v334_v45, %v325_v27  ;;  %v370_v54 = vadd.f32 %v369_v29, %v368_v37 }
  0xea   : > { %v348_v38 = vadd.f32 %v347_v32, %v346_v24  ;;  %v382_v39 = vadd.f32 %v381_v34, %v380_v35  ;;  %v377_v41 = vadd.f32 %v376_v18, %v375_v23  ;;  %v343_v48 = vadd.f32 %v342_v40, %v341_v28 }
  0xeb   : > { %v361_v59 = vadd.f32 %v360_v50, %v359_v42 }
  0xec   : > { %v349_v43 = vrot.slane %v348_v38, 2  ;;  %v383_v44 = vrot.slane %v382_v39, 4  ;;  %v378_v49 = vrot.slane %v377_v41, 1  ;;  %v400_v57 = vsel %vm399_vm2, %v343_v48, %v398_v53 }
  0xed   : > { %v403_v62 = vsel %vm397_vm1, %v370_v54, %v361_v59 }
  0xee   : > { %v350_v46 = vadd.f32 %v349_v43, %v348_v38  ;;  %v384_v47 = vadd.f32 %v383_v44, %v382_v39  ;;  %v379_v58 = vadd.f32 %v378_v49, %v377_v41 }
  0xf0   : > { %v351_v51 = vrot.slane %v350_v46, 1  ;;  %v385_v52 = vrot.slane %v384_v47, 2  ;;  %v404_v0 = vsel %vm399_vm2, %v379_v58, %v403_v62 }
  0xf2   : > { %v352_v55 = vadd.f32 %v351_v51, %v350_v46  ;;  %v386_v56 = vadd.f32 %v385_v52, %v384_v47 }
  0xf4   : > { %v402_v60 = vsel %vm401_vm3, %v352_v55, %v400_v57  ;;  %v387_v61 = vrot.slane %v386_v56, 1 }
  0xf5   : > { %409 = vst.msk [vmem:[%s202_s8] sm:$0xf] %vm408_vm4, %v402_v60 }
  0xf6   : > { %v388_v63 = vadd.f32 %v387_v61, %v386_v56 }
  0xf8   : > { %v405_v1 = vsel %vm401_vm3, %v388_v63, %v404_v0 }
  0xf9   : > { %410 = vst.msk [vmem:[%s202_s8 + $0x4] sm:$0xf] %vm408_vm4, %v405_v1 }
  0xfa   : > { %670 = shalt.err (!%p667_p3)
}
  0xfb   : > { %s671_s14 = scalar_lea.hbm %s951_s26, 128  ;;  %s675_s19 = scalar_lea.hbm %s1000_s2, 1024 }
  0xfc   : > { %p672_p2 = scmp.ne.s32.totalorder %s951_s26, %s671_s14  ;;  %p676_p5 = scmp.lt.s32.totalorder %s951_s26, %s1000_s2 }
  0xfd   : > { %p677_p8 = scmp.lt.s32.totalorder %s675_s19, %s671_s14 }
  0xfe   : > { %p673_p4 = pnand %p672_p2, %p1010_p0 }
  0xff   : > { %p678_p6 = por %p677_p8, %p676_p5 }
 0x100   : > { %p674_p11 = pneg %p673_p4 }
 0x102   : > { %p679_p12 = pnand %p678_p6, %p674_p11 }
 0x104   : > { %682 = shalt.err (!%p679_p12)
}
 0x105   : > { %s734_s3 = smov 64   ;;  %s735_s5 = smov 4  }
 0x106   : > { %548 = dma.vmem_to_hbm [thread:$0]  (%p1010_p0), %s953_s17, 128, %s951_s26, %s412_s13, %s734_s3, %s734_s3, %s735_s5  }
 0x107 PF: > { %p562_p10 = scmp.ge.s32.totalorder %s725_s12, 2  ;;  %s440_s20 = sand.u32 1, %s713_s9  }
 0x108   : > { %p1011_p7 = scmp.ne.s32.totalorder %s1006_s22, 0  ;;  %s441_s8 = scalar_lea.sflag [#allocation4], %s440_s20 }
 0x10a   : > { %p558_p9 = pnand %p562_p10, %p1011_p7 }
 0x10c   : > { %p559_p13 = pneg %p558_p9 }
 0x10e   : > { %708 = dma.done.wait (%p559_p13), %s441_s8, 128  }
 0x10f   : > { %710 = vsyncadd (%p559_p13), %s441_s8, 4294967168  ;;  %p18_p1 = scmp.ge.s32.totalorder %s776_s15, 10   ;;  %s1012_s9 = smov %s717_s10 }
 0x110   : > { %s1013_s10 = smov %s721_s11  ;;  %s1014_s11 = smov %s788_s18 }
 0x111   : > { %s1015_s12 = smov %s776_s15  ;;  %20 = sbr.rel (!%p18_p1) target bundleno = 7 (0x7), region = 86 }
 0x116   :  { %446 = vsyncpa [#allocation3], 1 }
 0x117   :  { %448 = vsyncpa [#allocation3 + $0x1], 1 }
 0x118   :  { %449 = vsyncpa [#allocation6], 1 }
 0x119   :  { %451 = vsyncpa [#allocation6 + $0x1], 1 }
 0x11a   :  { %452 = vsyncpa [#allocation4], 1 }
 0x11b   :  { %454 = vsyncpa [#allocation4 + $0x1], 1 }

</bundles_post_ra>
